<compile_context>
chip_gen: v7x
topology: tpu7x:2x2x1
jax: 0.10.0
libtpu: 0.0.40
codegen_flags: <defaults>
</compile_context>

<pallas_src>
import math
import functools

import jax
import jax.numpy as jnp
from jax import lax
from jax.experimental import pallas as pl
from jax.experimental.pallas import tpu as pltpu


def _round_up(x, m):
    return ((x + m - 1) // m) * m


def _get_padding_elem(L_in, stride, kernel_size, dilation=1):
    """speechbrain.nnet.CNN.get_padding_elem ('same' padding amount per side)."""
    if stride > 1:
        return kernel_size // 2
    L_out = (L_in - dilation * (kernel_size - 1) - 1) // stride + 1
    return (L_in - L_out) // 2


def _leaf_kernel(xw_ref, w_ref, g_ref, pcen_ref, out_ref,
                 patch_ref, mod_ref, pooled_ref, carry_ref, *,
                 Kc, n_kc, K_pool, Tm_pad, To, S, pad_pool, Tconv, F_pad, floor):
    f32 = jnp.float32
    t_idx = pl.program_id(1)          # time-tile index (sequential / "arbitrary")

    # ---- 1) chunked im2col + stacked Gabor conv ----------------------------------------
    # xw_ref holds 16 pre-shifted copies of the halo'd window (row r = x shifted by r), so
    # patch row (16*i + r) of a chunk is simply xw_ref[r, chunk_off + 16*i + t]: each block
    # copy is one dense, bf16-tile-aligned (16, Tm_pad) load + store.  The contraction is
    # chunked in Kc rows so the bf16 patch scratch stays small (v7x VMEM headroom).
    acc = None
    for c in range(n_kc):
        base = c * Kc
        for i in range(Kc // 16):
            off = base + i * 16
            patch_ref[i * 16:(i + 1) * 16, :] = xw_ref[:, off:off + Tm_pad]
        pc = jnp.dot(w_ref[:, base:base + Kc], patch_ref[...],
                     preferred_element_type=f32)                         # (2F_pad, Tm_pad) f32
        acc = pc if acc is None else acc + pc

    sr = acc[:F_pad, :]
    si = acc[F_pad:, :]
    mod_ref[...] = sr * sr + si * si                                     # squared modulus

    # ---- 2) pooling 'same' zero padding: zero conv outputs outside [0, Tconv) ----------
    # Only tiles touching the utterance boundary need the mask; interior tiles skip the
    # three full VPU passes over the (F_pad, Tm_pad) modulus.
    start_g = t_idx * (To * S) - pad_pool
    needs_mask = (start_g < 0) | (start_g + (To - 1) * S + K_pool > Tconv)

    @pl.when(needs_mask)
    def _():
        u = lax.broadcasted_iota(jnp.int32, (F_pad, Tm_pad), 1)
        gpos = u + start_g
        mod_ref[...] = jnp.where((gpos >= 0) & (gpos < Tconv), mod_ref[...], 0.0)

    # ---- 3) Gaussian lowpass pooling (depthwise, stride S), frames grouped by 8 --------
    # Static lane offsets are kept (dynamic minor-dim slice starts are avoided for lowering
    # robustness); the unroll is bounded by To <= 128 (<=16 groups per tile).
    g = g_ref[...]                                                       # (F_pad, K_pool)
    for jg in range(To // 8):
        cols = []
        for r in range(8):
            j = jg * 8 + r
            win = mod_ref[:, j * S: j * S + K_pool]                      # (F_pad, K_pool)
            cols.append(jnp.sum(g * win, axis=1, keepdims=True))         # (F_pad, 1)
        pooled_ref[:, jg * 8:(jg + 1) * 8] = jnp.concatenate(cols, axis=1)
    pooled = jnp.maximum(pooled_ref[...], 1e-5)                          # (F_pad, To)

    # ---- 4) PCEN ------------------------------------------------------------------------
    alpha = pcen_ref[:, 0:1]
    delta = pcen_ref[:, 1:2]
    inv_root = pcen_ref[:, 2:3]
    w_s = pcen_ref[:, 3:4]
    omw = pcen_ref[:, 4:5]        # 1 - w (hoisted)
    delta_rt = pcen_ref[:, 5:6]   # delta ** (1/root) (hoisted)

    # First-order recurrence s_j = w*p_j + (1-w)*s_{j-1} as a log-depth scan over affine
    # maps along the lane (time) axis.  Lane-dense tiles use pltpu.roll (XLU slot) with one
    # hoisted iota mask; small tiles fall back to the concat formulation.
    a = jnp.broadcast_to(omw, (F_pad, To))
    b = w_s * pooled
    if To % 128 == 0:
        lane = lax.broadcasted_iota(jnp.int32, (F_pad, To), 1)
        d = 1
        while d < To:
            keep = lane >= d
            a_prev = jnp.where(keep, pltpu.roll(a, shift=d, axis=1), 1.0)
            b_prev = jnp.where(keep, pltpu.roll(b, shift=d, axis=1), 0.0)
            b = a * b_prev + b
            a = a * a_prev
            d *= 2
    else:
        d = 1
        while d < To:
            a_prev = jnp.concatenate([jnp.ones((F_pad, d), f32), a[:, :To - d]], axis=1)
            b_prev = jnp.concatenate([jnp.zeros((F_pad, d), f32), b[:, :To - d]], axis=1)
            b = a * b_prev + b
            a = a * a_prev
            d *= 2

    # EMA initial state: first pooled frame of the utterance; afterwards the carry scratch
    # chains the recurrence across time tiles (time axis is a sequential grid dimension).
    @pl.when(t_idx == 0)
    def _():
        carry_ref[...] = pooled[:, 0:1]
    s0 = carry_ref[...]                                                  # (F_pad, 1)
    ema = a * s0 + b                                                     # (F_pad, To)
    carry_ref[...] = ema[:, To - 1:To]

    smooth = jnp.exp(alpha * jnp.log(floor + ema))                       # (floor + ema) ** alpha
    ratio = pooled / smooth + delta                                      # exact divide (parity)
    out = jnp.exp(inv_root * jnp.log(ratio)) - delta_rt
    out_ref[...] = out.astype(out_ref.dtype)                             # (F_pad, To), lane-dense


def leaf_forward(x, params, *, out_channels, window_len=25.0, window_stride=10.0,
                 sample_rate=16000, pcen_floor=1e-12, frames_per_tile=128):
    """Pallas implementation of speechbrain Leaf.forward (skip_transpose=False, use_pcen=True)."""
    x = x.astype(jnp.float32)                                 # fwd_default_precision cast
    B, T = x.shape
    F = out_channels
    K = int(sample_rate * window_len // 1000 + 1)             # window_size (conv kernel length)
    S = int(sample_rate * window_stride // 1000)              # pooling stride (hop)
    F_pad = _round_up(F, 8)

    # --- 'same' padding bookkeeping (speechbrain semantics) ---
    pad_conv = _get_padding_elem(T, 1, K)
    Tconv = T + 2 * pad_conv - K + 1
    pad_pool = _get_padding_elem(Tconv, S, K)
    T_out = (Tconv + 2 * pad_pool - K) // S + 1

    # --- time tiling: To output frames per grid step (lane-dense, 128, at realistic sizes) ---
    To = min(_round_up(max(frames_per_tile, 8), 8), _round_up(T_out, 8))
    n_tiles = -(-T_out // To)

    # --- conv contraction chunking: Kc rows (multiple of 16 => native bf16 sublane tiles) ---
    K16 = _round_up(K, 16)
    if K16 <= 128:
        Kc, n_kc = K16, 1
    else:
        Kc = 128
        n_kc = -(-K16 // 128)
    K_full = Kc * n_kc                                        # conv contraction length (zero-padded)
    K_pool = _round_up(K, 8)                                  # pooling lane-window length

    Tm_pad = _round_up((To - 1) * S + K_pool, 128)            # modulus span per tile (lane-padded)
    Lw8 = _round_up(Tm_pad + K_full - 16, 128)                # pre-shifted window length per tile

    # --- Gabor filterbank from learnable (mu, sigma); real/imag stacked; bf16 matmul operand ---
    # TODO(synk): the mel-filterbank-derived Gabor (mu, sigma) initialization of GaborConv1d is
    # init-time only and is replaced here by explicit (mu, sigma) parameters.
    sigma_lo = 4.0 * math.sqrt(2.0 * math.log(2.0)) / math.pi
    sigma_hi = K * math.sqrt(2.0 * math.log(2.0)) / math.pi
    mu = jnp.clip(params["gabor_mu"].astype(jnp.float32), 0.0, math.pi)        # (F,)
    sig = jnp.clip(params["gabor_sigma"].astype(jnp.float32), sigma_lo, sigma_hi)
    t = jnp.arange(-(K // 2), (K + 1) // 2, dtype=jnp.float32)                 # (K,)
    gauss = jnp.exp(jnp.outer(1.0 / (2.0 * sig * sig), -(t * t)))              # (F, K)
    denom = (1.0 / (math.sqrt(2.0 * math.pi) * sig))[:, None]
    phase = jnp.outer(mu, t)
    w_real = denom * jnp.cos(phase) * gauss
    w_imag = denom * jnp.sin(phase) * gauss
    w_stacked = jnp.zeros((2 * F_pad, K_full), jnp.float32)
    w_stacked = w_stacked.at[:F, :K].set(w_real).at[F_pad:F_pad + F, :K].set(w_imag)
    w_stacked = w_stacked.astype(jnp.bfloat16)

    # --- Gaussian lowpass pooling window from learnable sigma (hoisted, f32) ---
    pool_sigma = jnp.full((F_pad,), 0.4, jnp.float32).at[:F].set(
        params["pool_sigma"].astype(jnp.float32).reshape(F))
    sig_p = jnp.clip(pool_sigma, 2.0 / K, 0.5)[:, None]                        # (F_pad, 1)
    kk = jnp.arange(K, dtype=jnp.float32)[None, :]
    g = jnp.exp(-0.5 * ((kk - 0.5 * (K - 1)) / (sig_p * (0.5 * (K - 1)))) ** 2)
    g_pad = jnp.zeros((F_pad, K_pool), jnp.float32).at[:, :K].set(g)

    # --- PCEN per-channel constants (clips / reciprocals / powers hoisted) ---
    def _padded(v, fill):
        return jnp.full((F_pad,), fill, jnp.float32).at[:F].set(
            v.astype(jnp.float32).reshape(F))
    alpha = jnp.minimum(_padded(params["pcen_alpha"], 1.0), 1.0)
    delta = _padded(params["pcen_delta"], 1.0)
    root = jnp.maximum(_padded(params["pcen_root"], 1.0), 1.0)
    inv_root = 1.0 / root
    w_s = jnp.clip(_padded(params["pcen_smooth"], 1.0), 0.0, 1.0)
    pcen = jnp.stack([alpha, delta, inv_root, w_s, 1.0 - w_s, delta ** inv_root], axis=1)

    # --- pre-shifted, halo'd input windows (bf16); zeros realise the conv 'same' padding ---
    # wins[b, tile, r, t] = x_ext[b, tile*To*S + t + r], r = 0..15.
    pad_left = pad_conv + pad_pool
    L_shift = (n_tiles - 1) * To * S + Lw8
    pad_right = max(0, L_shift + 16 - (pad_left + T))
    x_ext = jnp.pad(x, ((0, 0), (pad_left, pad_right))).astype(jnp.bfloat16)
    shifted = jnp.stack([x_ext[:, r:r + L_shift] for r in range(16)], axis=1)  # (B, 16, L_shift)
    wins = jnp.stack([shifted[:, :, t0 * To * S: t0 * To * S + Lw8]
                      for t0 in range(n_tiles)], axis=1)                        # (B, n_tiles, 16, Lw8)

    # --- VMEM budget: scratch + conv accumulator temp + double-buffered blocks, device-aware ---
    bpf, bpb = 4, 2
    vmem_est = (Kc * Tm_pad * bpb                         # bf16 im2col chunk scratch
                + 2 * F_pad * Tm_pad * bpf                # (2F, Tm) conv accumulator temp
                + F_pad * Tm_pad * bpf                    # modulus scratch
                + 8 * F_pad * To * bpf                    # pooled + PCEN scan temporaries
                + 2 * 16 * Lw8 * bpb                      # double-buffered input windows
                + 2 * F_pad * To * bpf                    # double-buffered output blocks
                + 2 * (2 * F_pad * K_full * bpb + F_pad * K_pool * bpf + F_pad * 6 * bpf))
    try:
        vmem_cap = int(pltpu.get_tpu_info().vmem_capacity_bytes)
    except Exception:
        vmem_cap = 64 * 2 ** 20                           # conservative (v7x per-core VMEM)
    vmem_limit = int(min(max(2 * vmem_est, 32 * 2 ** 20), int(0.75 * vmem_cap)))

    kernel = functools.partial(_leaf_kernel, Kc=Kc, n_kc=n_kc, K_pool=K_pool, Tm_pad=Tm_pad,
                               To=To, S=S, pad_pool=pad_pool, Tconv=Tconv, F_pad=F_pad,
                               floor=pcen_floor)

    out = pl.pallas_call(
        kernel,
        out_shape=jax.ShapeDtypeStruct((B, n_tiles, F_pad, To), jnp.float32),
        grid_spec=pltpu.PrefetchScalarGridSpec(
            num_scalar_prefetch=0,
            grid=(B, n_tiles),
            in_specs=[
                pl.BlockSpec((None, None, 16, Lw8), lambda b, t: (b, t, 0, 0)),  # shifted windows
                pl.BlockSpec((2 * F_pad, K_full), lambda b, t: (0, 0)),          # stacked Gabor (bf16)
                pl.BlockSpec((F_pad, K_pool), lambda b, t: (0, 0)),              # pooling Gaussians
                pl.BlockSpec((F_pad, 6), lambda b, t: (0, 0)),                   # PCEN constants
            ],
            out_specs=pl.BlockSpec((None, None, F_pad, To), lambda b, t: (b, t, 0, 0)),
            scratch_shapes=[
                pltpu.VMEM((Kc, Tm_pad), jnp.bfloat16),                          # im2col chunk
                pltpu.VMEM((F_pad, Tm_pad), jnp.float32),                        # modulus
                pltpu.VMEM((F_pad, To), jnp.float32),                            # pooled frames
                pltpu.VMEM((F_pad, 1), jnp.float32),                             # PCEN EMA carry
            ],
        ),
        compiler_params=pltpu.CompilerParams(
            dimension_semantics=("parallel", "arbitrary"),   # time axis carries the EMA state
            vmem_limit_bytes=vmem_limit,
        ),
    )(wins, w_stacked, g_pad, pcen)

    out = jnp.transpose(out, (0, 1, 3, 2)).reshape(B, n_tiles * To, F_pad)
    return out[:, :T_out, :F]                                # (B, T_out, F) speechbrain order


def _make_params(F_ch, key_unused=None):
    # Deterministic synthetic parameters (shapes per the module __init__; not a checkpoint).
    return {
        "gabor_mu": jnp.linspace(0.2, math.pi - 0.2, F_ch, dtype=jnp.float32),
        "gabor_sigma": jnp.linspace(2.0, 10.0, F_ch, dtype=jnp.float32),
        "pool_sigma": jnp.full((F_ch,), 0.4, dtype=jnp.float32),     # init constant 0.4
        "pcen_alpha": jnp.full((F_ch,), 0.96, dtype=jnp.float32),
        "pcen_delta": jnp.full((F_ch,), 2.0, dtype=jnp.float32),
        "pcen_root": jnp.full((F_ch,), 2.0, dtype=jnp.float32),
        "pcen_smooth": jnp.full((F_ch,), 0.04, dtype=jnp.float32),
    }


if __name__ == "__main__":
    key = jax.random.PRNGKey(0)
    k1, k2 = jax.random.split(key)

    # Config 1 (small): K = 25 taps, hop = 8 samples, single conv chunk, tiny tile.
    B1, T1, F1 = 2, 64, 8
    x1 = jax.random.normal(k1, (B1, T1), dtype=jnp.float32)
    y1 = leaf_forward(x1, _make_params(F1), out_channels=F1,
                      window_len=6.0, window_stride=2.0, sample_rate=4000)
    y1 = jax.block_until_ready(y1)
    assert y1.shape == (2, 8, 8), y1.shape
    assert bool(jnp.all(jnp.isfinite(y1)))

    # Config 2 (exercises K-chunking, n_kc=2): K = 145 taps, hop = 32 samples, 40 channels.
    B2, T2, F2 = 1, 400, 40
    x2 = jax.random.normal(k2, (B2, T2), dtype=jnp.float32)
    y2 = leaf_forward(x2, _make_params(F2), out_channels=F2,
                      window_len=9.0, window_stride=2.0, sample_rate=16000)
    y2 = jax.block_until_ready(y2)
    assert y2.shape == (1, 13, 40), y2.shape
    assert bool(jnp.all(jnp.isfinite(y2)))

    print("KERNEL_OK")
</pallas_src>

<mosaic_0001>
module attributes {stable_mosaic.version = 11 : i64} {
  func.func @_leaf_kernel(%arg0: i32, %arg1: i32, %arg2: memref<1x1x16x256xbf16, #tpu.memory_space<vmem>>, %arg3: memref<16x32xbf16, #tpu.memory_space<vmem>>, %arg4: memref<8x32xf32, #tpu.memory_space<vmem>>, %arg5: memref<8x6xf32, #tpu.memory_space<vmem>>, %arg6: memref<1x1x8x8xf32, #tpu.memory_space<vmem>>, %arg7: memref<32x128xbf16, #tpu.memory_space<vmem>>, %arg8: memref<8x128xf32, #tpu.memory_space<vmem>>, %arg9: memref<8x8xf32, #tpu.memory_space<vmem>>, %arg10: memref<8x1xf32, #tpu.memory_space<vmem>>) attributes {dimension_semantics = [#tpu.dimension_semantics<parallel>, #tpu.dimension_semantics<arbitrary>], iteration_bounds = array<i64: 2, 1>, scalar_prefetch = 0 : i64, scratch_operands = 4 : i64, tpu.core_type = #tpu.core_type<tc>, window_params = [{transform_indices = @transform_0, window_bounds = array<i64: 1, 1, 16, 256>}, {pipeline_mode = #tpu.pipeline_mode<synchronous>, transform_indices = @transform_1, window_bounds = array<i64: 16, 32>}, {pipeline_mode = #tpu.pipeline_mode<synchronous>, transform_indices = @transform_2, window_bounds = array<i64: 8, 32>}, {pipeline_mode = #tpu.pipeline_mode<synchronous>, transform_indices = @transform_3, window_bounds = array<i64: 8, 6>}, {transform_indices = @transform_4, window_bounds = array<i64: 1, 1, 8, 8>}]} {
    %c0 = arith.constant 0 : index
    %c0_0 = arith.constant 0 : index
    %c0_1 = arith.constant 0 : index
    %c0_2 = arith.constant 0 : index
    %0 = vector.load %arg2[%c0, %c0_0, %c0_1, %c0_2] : memref<1x1x16x256xbf16, #tpu.memory_space<vmem>>, vector<1x1x16x128xbf16>
    %1 = vector.shape_cast %0 : vector<1x1x16x128xbf16> to vector<16x128xbf16>
    %c0_3 = arith.constant 0 : index
    %c0_4 = arith.constant 0 : index
    %2 = vector.load %arg7[%c0_3, %c0_4] : memref<32x128xbf16, #tpu.memory_space<vmem>>, vector<16x128xbf16>
    tpu.vector_store %arg7[%c0_3, %c0_4], %1 {strides = array<i32>} : memref<32x128xbf16, #tpu.memory_space<vmem>>, vector<16x128xbf16>,
    %c0_5 = arith.constant 0 : index
    %c0_6 = arith.constant 0 : index
    %c0_7 = arith.constant 0 : index
    %c16 = arith.constant 16 : index
    %3 = vector.load %arg2[%c0_5, %c0_6, %c0_7, %c16] : memref<1x1x16x256xbf16, #tpu.memory_space<vmem>>, vector<1x1x16x128xbf16>
    %4 = vector.shape_cast %3 : vector<1x1x16x128xbf16> to vector<16x128xbf16>
    %c16_8 = arith.constant 16 : index
    %c0_9 = arith.constant 0 : index
    %5 = vector.load %arg7[%c16_8, %c0_9] : memref<32x128xbf16, #tpu.memory_space<vmem>>, vector<16x128xbf16>
    tpu.vector_store %arg7[%c16_8, %c0_9], %4 {strides = array<i32>} : memref<32x128xbf16, #tpu.memory_space<vmem>>, vector<16x128xbf16>,
    %c0_10 = arith.constant 0 : index
    %c0_11 = arith.constant 0 : index
    %6 = vector.load %arg3[%c0_10, %c0_11] : memref<16x32xbf16, #tpu.memory_space<vmem>>, vector<16x32xbf16>
    %c0_12 = arith.constant 0 : index
    %c0_13 = arith.constant 0 : index
    %7 = vector.load %arg7[%c0_12, %c0_13] : memref<32x128xbf16, #tpu.memory_space<vmem>>, vector<32x128xbf16>
    %cst = arith.constant dense<0.000000e+00> : vector<16x128xf32>
    %8 = tpu.matmul %6, %7, %cst {dimension_numbers = #tpu.dot_dimension_numbers<[1], [0], [0], [1], [0, 0, 1, 1], [], []>} : vector<16x32xbf16>, vector<32x128xbf16>, vector<16x128xf32> -> vector<16x128xf32>
    %9 = vector.extract_strided_slice %8 {offsets = [0, 0], sizes = [8, 128], strides = [1, 1]} : vector<16x128xf32> to vector<8x128xf32>
    %10 = vector.extract_strided_slice %8 {offsets = [8, 0], sizes = [8, 128], strides = [1, 1]} : vector<16x128xf32> to vector<8x128xf32>
    %11 = arith.mulf %9, %9 : vector<8x128xf32>
    %12 = arith.mulf %10, %10 : vector<8x128xf32>
    %13 = arith.addf %11, %12 : vector<8x128xf32>
    %c0_14 = arith.constant 0 : index
    %c0_15 = arith.constant 0 : index
    %14 = vector.load %arg8[%c0_14, %c0_15] : memref<8x128xf32, #tpu.memory_space<vmem>>, vector<8x128xf32>
    tpu.vector_store %arg8[%c0_14, %c0_15], %13 {strides = array<i32>} : memref<8x128xf32, #tpu.memory_space<vmem>>, vector<8x128xf32>,
    %c64_i32 = arith.constant 64 : i32
    %15 = arith.muli %arg1, %c64_i32 : i32
    %c12_i32 = arith.constant 12 : i32
    %16 = arith.subi %15, %c12_i32 : i32
    %c0_i32 = arith.constant 0 : i32
    %17 = arith.cmpi slt, %16, %c0_i32 : i32
    %c56_i32 = arith.constant 56 : i32
    %18 = arith.addi %16, %c56_i32 : i32
    %c32_i32 = arith.constant 32 : i32
    %19 = arith.addi %18, %c32_i32 : i32
    %c64_i32_16 = arith.constant 64 : i32
    %20 = arith.cmpi sgt, %19, %c64_i32_16 : i32
    %21 = arith.ori %17, %20 : i1
    %22 = arith.extui %21 : i1 to i32
    %c0_i32_17 = arith.constant 0 : i32
    %23 = arith.cmpi ne, %22, %c0_i32_17 : i32
    scf.if %23 {
      %126 = tpu.iota {dimensions = array<i32: 1>} : vector<8x128xi32>
      %127 = vector.broadcast %16 : i32 to vector<8x128xi32>
      %128 = arith.addi %126, %127 : vector<8x128xi32>
      %c0_i32_67 = arith.constant 0 : i32
      %129 = vector.broadcast %c0_i32_67 : i32 to vector<8x128xi32>
      %130 = arith.cmpi sge, %128, %129 : vector<8x128xi32>
      %c64_i32_68 = arith.constant 64 : i32
      %131 = vector.broadcast %c64_i32_68 : i32 to vector<8x128xi32>
      %132 = arith.cmpi slt, %128, %131 : vector<8x128xi32>
      %133 = arith.andi %130, %132 : vector<8x128xi1>
      %c0_69 = arith.constant 0 : index
      %c0_70 = arith.constant 0 : index
      %134 = vector.load %arg8[%c0_69, %c0_70] : memref<8x128xf32, #tpu.memory_space<vmem>>, vector<8x128xf32>
      %cst_71 = arith.constant 0.000000e+00 : f32
      %135 = vector.broadcast %cst_71 : f32 to vector<8x128xf32>
      %136 = arith.select %133, %134, %135 : vector<8x128xi1>, vector<8x128xf32>
      %c0_72 = arith.constant 0 : index
      %c0_73 = arith.constant 0 : index
      %137 = vector.load %arg8[%c0_72, %c0_73] : memref<8x128xf32, #tpu.memory_space<vmem>>, vector<8x128xf32>
      tpu.vector_store %arg8[%c0_72, %c0_73], %136 {strides = array<i32>} : memref<8x128xf32, #tpu.memory_space<vmem>>, vector<8x128xf32>,
    } else {
    }
    %c0_18 = arith.constant 0 : index
    %c0_19 = arith.constant 0 : index
    %24 = vector.load %arg4[%c0_18, %c0_19] : memref<8x32xf32, #tpu.memory_space<vmem>>, vector<8x32xf32>
    %c0_20 = arith.constant 0 : index
    %c0_21 = arith.constant 0 : index
    %25 = vector.load %arg8[%c0_20, %c0_21] : memref<8x128xf32, #tpu.memory_space<vmem>>, vector<8x32xf32>
    %26 = arith.mulf %24, %25 : vector<8x32xf32>
    %cst_22 = arith.constant dense<0.000000e+00> : vector<8xf32>
    %27 = vector.multi_reduction <add>, %26, %cst_22 [1] : vector<8x32xf32> to vector<8xf32>
    %28 = vector.shape_cast %27 : vector<8xf32> to vector<8x1xf32>
    %c0_23 = arith.constant 0 : index
    %c8 = arith.constant 8 : index
    %29 = vector.load %arg8[%c0_23, %c8] : memref<8x128xf32, #tpu.memory_space<vmem>>, vector<8x32xf32>
    %30 = arith.mulf %24, %29 : vector<8x32xf32>
    %cst_24 = arith.constant dense<0.000000e+00> : vector<8xf32>
    %31 = vector.multi_reduction <add>, %30, %cst_24 [1] : vector<8x32xf32> to vector<8xf32>
    %32 = vector.shape_cast %31 : vector<8xf32> to vector<8x1xf32>
    %c0_25 = arith.constant 0 : index
    %c16_26 = arith.constant 16 : index
    %33 = vector.load %arg8[%c0_25, %c16_26] : memref<8x128xf32, #tpu.memory_space<vmem>>, vector<8x32xf32>
    %34 = arith.mulf %24, %33 : vector<8x32xf32>
    %cst_27 = arith.constant dense<0.000000e+00> : vector<8xf32>
    %35 = vector.multi_reduction <add>, %34, %cst_27 [1] : vector<8x32xf32> to vector<8xf32>
    %36 = vector.shape_cast %35 : vector<8xf32> to vector<8x1xf32>
    %c0_28 = arith.constant 0 : index
    %c24 = arith.constant 24 : index
    %37 = vector.load %arg8[%c0_28, %c24] : memref<8x128xf32, #tpu.memory_space<vmem>>, vector<8x32xf32>
    %38 = arith.mulf %24, %37 : vector<8x32xf32>
    %cst_29 = arith.constant dense<0.000000e+00> : vector<8xf32>
    %39 = vector.multi_reduction <add>, %38, %cst_29 [1] : vector<8x32xf32> to vector<8xf32>
    %40 = vector.shape_cast %39 : vector<8xf32> to vector<8x1xf32>
    %c0_30 = arith.constant 0 : index
    %c32 = arith.constant 32 : index
    %41 = vector.load %arg8[%c0_30, %c32] : memref<8x128xf32, #tpu.memory_space<vmem>>, vector<8x32xf32>
    %42 = arith.mulf %24, %41 : vector<8x32xf32>
    %cst_31 = arith.constant dense<0.000000e+00> : vector<8xf32>
    %43 = vector.multi_reduction <add>, %42, %cst_31 [1] : vector<8x32xf32> to vector<8xf32>
    %44 = vector.shape_cast %43 : vector<8xf32> to vector<8x1xf32>
    %c0_32 = arith.constant 0 : index
    %c40 = arith.constant 40 : index
    %45 = vector.load %arg8[%c0_32, %c40] : memref<8x128xf32, #tpu.memory_space<vmem>>, vector<8x32xf32>
    %46 = arith.mulf %24, %45 : vector<8x32xf32>
    %cst_33 = arith.constant dense<0.000000e+00> : vector<8xf32>
    %47 = vector.multi_reduction <add>, %46, %cst_33 [1] : vector<8x32xf32> to vector<8xf32>
    %48 = vector.shape_cast %47 : vector<8xf32> to vector<8x1xf32>
    %c0_34 = arith.constant 0 : index
    %c48 = arith.constant 48 : index
    %49 = vector.load %arg8[%c0_34, %c48] : memref<8x128xf32, #tpu.memory_space<vmem>>, vector<8x32xf32>
    %50 = arith.mulf %24, %49 : vector<8x32xf32>
    %cst_35 = arith.constant dense<0.000000e+00> : vector<8xf32>
    %51 = vector.multi_reduction <add>, %50, %cst_35 [1] : vector<8x32xf32> to vector<8xf32>
    %52 = vector.shape_cast %51 : vector<8xf32> to vector<8x1xf32>
    %c0_36 = arith.constant 0 : index
    %c56 = arith.constant 56 : index
    %53 = vector.load %arg8[%c0_36, %c56] : memref<8x128xf32, #tpu.memory_space<vmem>>, vector<8x32xf32>
    %54 = arith.mulf %24, %53 : vector<8x32xf32>
    %cst_37 = arith.constant dense<0.000000e+00> : vector<8xf32>
    %55 = vector.multi_reduction <add>, %54, %cst_37 [1] : vector<8x32xf32> to vector<8xf32>
    %56 = vector.shape_cast %55 : vector<8xf32> to vector<8x1xf32>
    %57 = tpu.concatenate %28, %32, %36, %40, %44, %48, %52, %56 in 1 : vector<8x1xf32>, vector<8x1xf32>, vector<8x1xf32>, vector<8x1xf32>, vector<8x1xf32>, vector<8x1xf32>, vector<8x1xf32>, vector<8x1xf32> -> vector<8x8xf32>
    %c0_38 = arith.constant 0 : index
    %c0_39 = arith.constant 0 : index
    %58 = vector.load %arg9[%c0_38, %c0_39] : memref<8x8xf32, #tpu.memory_space<vmem>>, vector<8x8xf32>
    tpu.vector_store %arg9[%c0_38, %c0_39], %57 {strides = array<i32>} : memref<8x8xf32, #tpu.memory_space<vmem>>, vector<8x8xf32>,
    %c0_40 = arith.constant 0 : index
    %c0_41 = arith.constant 0 : index
    %59 = vector.load %arg9[%c0_40, %c0_41] : memref<8x8xf32, #tpu.memory_space<vmem>>, vector<8x8xf32>
    %cst_42 = arith.constant 9.99999974E-6 : f32
    %60 = vector.broadcast %cst_42 : f32 to vector<8x8xf32>
    %61 = arith.maximumf %59, %60 : vector<8x8xf32>
    %c0_43 = arith.constant 0 : index
    %c0_44 = arith.constant 0 : index
    %62 = vector.load %arg5[%c0_43, %c0_44] : memref<8x6xf32, #tpu.memory_space<vmem>>, vector<8x1xf32>
    %c0_45 = arith.constant 0 : index
    %c1 = arith.constant 1 : index
    %63 = vector.load %arg5[%c0_45, %c1] : memref<8x6xf32, #tpu.memory_space<vmem>>, vector<8x1xf32>
    %c0_46 = arith.constant 0 : index
    %c2 = arith.constant 2 : index
    %64 = vector.load %arg5[%c0_46, %c2] : memref<8x6xf32, #tpu.memory_space<vmem>>, vector<8x1xf32>
    %c0_47 = arith.constant 0 : index
    %c3 = arith.constant 3 : index
    %65 = vector.load %arg5[%c0_47, %c3] : memref<8x6xf32, #tpu.memory_space<vmem>>, vector<8x1xf32>
    %c0_48 = arith.constant 0 : index
    %c4 = arith.constant 4 : index
    %66 = vector.load %arg5[%c0_48, %c4] : memref<8x6xf32, #tpu.memory_space<vmem>>, vector<8x1xf32>
    %c0_49 = arith.constant 0 : index
    %c5 = arith.constant 5 : index
    %67 = vector.load %arg5[%c0_49, %c5] : memref<8x6xf32, #tpu.memory_space<vmem>>, vector<8x1xf32>
    %68 = vector.shape_cast %66 : vector<8x1xf32> to vector<8x1xf32>
    %69 = vector.broadcast %68 : vector<8x1xf32> to vector<8x8xf32>
    %70 = vector.broadcast %65 : vector<8x1xf32> to vector<8x8xf32>
    %71 = arith.mulf %70, %61 : vector<8x8xf32>
    %cst_50 = arith.constant 1.000000e+00 : f32
    %72 = vector.broadcast %cst_50 : f32 to vector<8x1xf32>
    %73 = vector.extract_strided_slice %69 {offsets = [0, 0], sizes = [8, 7], strides = [1, 1]} : vector<8x8xf32> to vector<8x7xf32>
    %74 = tpu.concatenate %72, %73 in 1 : vector<8x1xf32>, vector<8x7xf32> -> vector<8x8xf32>
    %cst_51 = arith.constant 0.000000e+00 : f32
    %75 = vector.broadcast %cst_51 : f32 to vector<8x1xf32>
    %76 = vector.extract_strided_slice %71 {offsets = [0, 0], sizes = [8, 7], strides = [1, 1]} : vector<8x8xf32> to vector<8x7xf32>
    %77 = tpu.concatenate %75, %76 in 1 : vector<8x1xf32>, vector<8x7xf32> -> vector<8x8xf32>
    %78 = arith.mulf %69, %77 : vector<8x8xf32>
    %79 = arith.addf %78, %71 : vector<8x8xf32>
    %80 = arith.mulf %69, %74 : vector<8x8xf32>
    %cst_52 = arith.constant 1.000000e+00 : f32
    %81 = vector.broadcast %cst_52 : f32 to vector<8x2xf32>
    %82 = vector.extract_strided_slice %80 {offsets = [0, 0], sizes = [8, 6], strides = [1, 1]} : vector<8x8xf32> to vector<8x6xf32>
    %83 = tpu.concatenate %81, %82 in 1 : vector<8x2xf32>, vector<8x6xf32> -> vector<8x8xf32>
    %cst_53 = arith.constant 0.000000e+00 : f32
    %84 = vector.broadcast %cst_53 : f32 to vector<8x2xf32>
    %85 = vector.extract_strided_slice %79 {offsets = [0, 0], sizes = [8, 6], strides = [1, 1]} : vector<8x8xf32> to vector<8x6xf32>
    %86 = tpu.concatenate %84, %85 in 1 : vector<8x2xf32>, vector<8x6xf32> -> vector<8x8xf32>
    %87 = arith.mulf %80, %86 : vector<8x8xf32>
    %88 = arith.addf %87, %79 : vector<8x8xf32>
    %89 = arith.mulf %80, %83 : vector<8x8xf32>
    %cst_54 = arith.constant 1.000000e+00 : f32
    %90 = vector.broadcast %cst_54 : f32 to vector<8x4xf32>
    %91 = vector.extract_strided_slice %89 {offsets = [0, 0], sizes = [8, 4], strides = [1, 1]} : vector<8x8xf32> to vector<8x4xf32>
    %92 = tpu.concatenate %90, %91 in 1 : vector<8x4xf32>, vector<8x4xf32> -> vector<8x8xf32>
    %cst_55 = arith.constant 0.000000e+00 : f32
    %93 = vector.broadcast %cst_55 : f32 to vector<8x4xf32>
    %94 = vector.extract_strided_slice %88 {offsets = [0, 0], sizes = [8, 4], strides = [1, 1]} : vector<8x8xf32> to vector<8x4xf32>
    %95 = tpu.concatenate %93, %94 in 1 : vector<8x4xf32>, vector<8x4xf32> -> vector<8x8xf32>
    %96 = arith.mulf %89, %95 : vector<8x8xf32>
    %97 = arith.addf %96, %88 : vector<8x8xf32>
    %98 = arith.mulf %89, %92 : vector<8x8xf32>
    %c0_i32_56 = arith.constant 0 : i32
    %99 = arith.cmpi eq, %arg1, %c0_i32_56 : i32
    %100 = arith.extui %99 : i1 to i32
    %c0_i32_57 = arith.constant 0 : i32
    %101 = arith.cmpi ne, %100, %c0_i32_57 : i32
    scf.if %101 {
      %126 = vector.extract_strided_slice %61 {offsets = [0, 0], sizes = [8, 1], strides = [1, 1]} : vector<8x8xf32> to vector<8x1xf32>
      %c0_67 = arith.constant 0 : index
      %c0_68 = arith.constant 0 : index
      %127 = vector.load %arg10[%c0_67, %c0_68] : memref<8x1xf32, #tpu.memory_space<vmem>>, vector<8x1xf32>
      tpu.vector_store %arg10[%c0_67, %c0_68], %126 {strides = array<i32>} : memref<8x1xf32, #tpu.memory_space<vmem>>, vector<8x1xf32>,
    } else {
    }
    %c0_58 = arith.constant 0 : index
    %c0_59 = arith.constant 0 : index
    %102 = vector.load %arg10[%c0_58, %c0_59] : memref<8x1xf32, #tpu.memory_space<vmem>>, vector<8x1xf32>
    %103 = vector.broadcast %102 : vector<8x1xf32> to vector<8x8xf32>
    %104 = arith.mulf %98, %103 : vector<8x8xf32>
    %105 = arith.addf %104, %97 : vector<8x8xf32>
    %106 = vector.extract_strided_slice %105 {offsets = [0, 7], sizes = [8, 1], strides = [1, 1]} : vector<8x8xf32> to vector<8x1xf32>
    %c0_60 = arith.constant 0 : index
    %c0_61 = arith.constant 0 : index
    %107 = vector.load %arg10[%c0_60, %c0_61] : memref<8x1xf32, #tpu.memory_space<vmem>>, vector<8x1xf32>
    tpu.vector_store %arg10[%c0_60, %c0_61], %106 {strides = array<i32>} : memref<8x1xf32, #tpu.memory_space<vmem>>, vector<8x1xf32>,
    %cst_62 = arith.constant 9.99999996E-13 : f32
    %108 = vector.broadcast %cst_62 : f32 to vector<8x8xf32>
    %109 = arith.addf %108, %105 : vector<8x8xf32>
    %110 = math.log %109 : vector<8x8xf32>
    %111 = vector.broadcast %62 : vector<8x1xf32> to vector<8x8xf32>
    %112 = arith.mulf %111, %110 : vector<8x8xf32>
    %113 = math.exp %112 : vector<8x8xf32>
    %114 = arith.divf %61, %113 : vector<8x8xf32>
    %115 = vector.broadcast %63 : vector<8x1xf32> to vector<8x8xf32>
    %116 = arith.addf %114, %115 : vector<8x8xf32>
    %117 = math.log %116 : vector<8x8xf32>
    %118 = vector.broadcast %64 : vector<8x1xf32> to vector<8x8xf32>
    %119 = arith.mulf %118, %117 : vector<8x8xf32>
    %120 = math.exp %119 : vector<8x8xf32>
    %121 = vector.broadcast %67 : vector<8x1xf32> to vector<8x8xf32>
    %122 = arith.subf %120, %121 : vector<8x8xf32>
    %c0_63 = arith.constant 0 : index
    %c0_64 = arith.constant 0 : index
    %c0_65 = arith.constant 0 : index
    %c0_66 = arith.constant 0 : index
    %123 = vector.load %arg6[%c0_63, %c0_64, %c0_65, %c0_66] : memref<1x1x8x8xf32, #tpu.memory_space<vmem>>, vector<1x1x8x8xf32>
    %124 = vector.shape_cast %123 : vector<1x1x8x8xf32> to vector<8x8xf32>
    %125 = vector.shape_cast %122 : vector<8x8xf32> to vector<1x1x8x8xf32>
    tpu.vector_store %arg6[%c0_63, %c0_64, %c0_65, %c0_66], %125 {strides = array<i32>} : memref<1x1x8x8xf32, #tpu.memory_space<vmem>>, vector<1x1x8x8xf32>,
    return
  }
  func.func @transform_0(%arg0: i32, %arg1: i32) -> (i32, i32, i32, i32) {
    %c0_i32 = arith.constant 0 : i32
    %c0_i32_0 = arith.constant 0 : i32
    %c0_i32_1 = arith.constant 0 : i32
    return %arg0, %arg1, %c0_i32, %c0_i32_0 : i32, i32, i32, i32
  }
  func.func @transform_1(%arg0: i32, %arg1: i32) -> (i32, i32) {
    %c0_i32 = arith.constant 0 : i32
    %c0_i32_0 = arith.constant 0 : i32
    %c0_i32_1 = arith.constant 0 : i32
    return %c0_i32, %c0_i32_0 : i32, i32
  }
  func.func @transform_2(%arg0: i32, %arg1: i32) -> (i32, i32) {
    %c0_i32 = arith.constant 0 : i32
    %c0_i32_0 = arith.constant 0 : i32
    %c0_i32_1 = arith.constant 0 : i32
    return %c0_i32, %c0_i32_0 : i32, i32
  }
  func.func @transform_3(%arg0: i32, %arg1: i32) -> (i32, i32) {
    %c0_i32 = arith.constant 0 : i32
    %c0_i32_0 = arith.constant 0 : i32
    %c0_i32_1 = arith.constant 0 : i32
    return %c0_i32, %c0_i32_0 : i32, i32
  }
  func.func @transform_4(%arg0: i32, %arg1: i32) -> (i32, i32, i32, i32) {
    %c0_i32 = arith.constant 0 : i32
    %c0_i32_0 = arith.constant 0 : i32
    %c0_i32_1 = arith.constant 0 : i32
    return %arg0, %arg1, %c0_i32, %c0_i32_0 : i32, i32, i32, i32
  }
}

</mosaic_0001>

<bundles_post_ra>
// kernel: tpu_custom_call.1
= control target key start
LH: loop header
LB: loop body
LE: loop exit
PB: predicated region body
PF: predicated region fallthrough
CT: control target
= control target key end

     0   :  { %9 = vsyncpa [#allocation7], 0  ;;  %s1336_s0 = inlined_call_operand.hbm [shape: bf16[2,1,16,256], index: 0, kind: input, shape index: {}]   ;;  %s1337_s1 = inlined_call_operand.hbm [shape: bf16[16,32], index: 1, kind: input, shape index: {}]   ;;  %s1338_s2 = inlined_call_operand.hbm [shape: f32[8,32], index: 2, kind: input, shape index: {}]   ;;  %s1339_s3 = inlined_call_operand.vmem [shape: f32[8,6], index: 3, kind: input, shape index: {}]   ;;  %s1340_s4 = inlined_call_operand.hbm [shape: f32[2,1,8,8], index: 4, kind: output, shape index: {}]  }
   0x1   :  { %11 = vsyncpa [#allocation7 + $0x1], 0 }
   0x2   :  { %12 = vsyncpa [#allocation10], 0 }
   0x3   :  { %13 = vsyncpa [#allocation8], 0 }
   0x4   :  { %15 = vsyncpa [#allocation8 + $0x1], 0  ;;  %s1041_s15 = smov 0   ;;  %s1043_s16 = smov 0  }
   0x5   :  { %s1045_s17 = smov 0   ;;  %s1047_s18 = smov 0  }
   0x6   :  { %s1049_s19 = smov 0   ;;  %s1051_s20 = smov 0  }
   0x7 LB: > { %s652_s21 = sadd.s32 4294967295, %s987_s20   ;;  %s653_s22 = sadd.s32 4294967294, %s987_s20   ;;  %s987_s20 = sphi %s1051_s20, %s21_s20   ;;  %s983_s19 = sphi %s1049_s19, %s1362_s19   ;;  %s979_s18 = sphi %s1047_s18, %s1361_s18   ;;  %s975_s17 = sphi %s1045_s17, %s1360_s17   ;;  %s971_s16 = sphi %s1043_s16, %s1359_s16   ;;  %s967_s15 = sphi %s1041_s15, %s1358_s15  }
   0x8   : > { %p55_p0 = scmp.ne.s32.totalorder %s971_s16, %s967_s15  ;;  %p1075_p1 = scmp.eq.s32.totalorder %s652_s21, 0 }
   0x9   : > { %p1079_p2 = scmp.eq.s32.totalorder %s652_s21, 1  ;;  %p150_p3 = scmp.eq.s32.totalorder %s653_s22, 1 }
   0xa   : > { %s1345_s23 = scalar_select %p1075_p1, 1, 0 }
   0xb   : > { %p1085_p4 = por %p1075_p1, %p55_p0  ;;  %p654_p5 = scmp.ge.s32.totalorder %s987_s20, 1 }
   0xc   : > { %p1090_p6 = por %p150_p3, %p55_p0  ;;  %p157_p7 = scmp.lt.s32.totalorder %s987_s20, 3 }
   0xd   : > { %s1347_s25 = scalar_select %p1085_p4, 1, 0 }
   0xe   : > { %s1348_s26 = scalar_select %p1090_p6, 1, 0 }
   0xf   : > { %p1095_p8 = pnand %p654_p5, %p157_p7  ;;  %s989_s28 = smov [#allocation9]  }
  0x10   : > { %s169_s29 = sshll.u32 %s989_s28, 4  ;;  %s990_s5 = smov [#allocation11]   ;;  %s1099_s29 = int_to_ptr.vmem [resolvable:$true] %s169_s29 }
  0x11   : > { %p699_p9 = pneg %p1095_p8  ;;  %s183_s6 = sshll.u32 %s990_s5, 4  ;;  %s1110_s6 = int_to_ptr.vmem [resolvable:$true] %s183_s6 }
  0x12   : > { %s815_s9 = scalar_lea.hbm %s1337_s1, 128 }
  0x13   : > { %p1106_p11 = pnand %p699_p9, %p1075_p1  ;;  %p816_p12 = scmp.ne.s32.totalorder %s1337_s1, %s815_s9 }
  0x14   : > { %p822_p5 = scmp.lt.u32.totalorder %s815_s9, %s1337_s1 }
  0x15   : > { %p817_p13 = pneg %p1106_p11 }
  0x17   : > { %p818_p0 = pnand %p817_p13, %p816_p12 }
  0x19   : > { %p819_p3 = pneg %p818_p0 }
  0x1b   : > { %p824_p7 = pnand %p822_p5, %p819_p3 }
  0x1d   : > { %827 = shalt.err (!%p824_p7)
}
  0x1e   : > { %s828_s14 = scalar_lea.vmem %s1099_s29, 128  ;;  %p836_p1 = scmp.lt.s32.totalorder %s1099_s29, %s1099_s29 }
  0x1f   : > { %p829_p9 = scmp.ne.s32.totalorder %s1099_s29, %s828_s14  ;;  %p837_p12 = scmp.lt.s32.totalorder %s828_s14, %s828_s14 }
  0x21   : > { %p831_p10 = pnand %p829_p9, %p817_p13  ;;  %p838_p0 = por %p837_p12, %p836_p1 }
  0x23   : > { %p832_p6 = pneg %p831_p10 }
  0x25   : > { %p839_p4 = pnand %p838_p0, %p832_p6 }
  0x27   : > { %842 = shalt.err (!%p839_p4)
}
  0x28   : > { %s991_s21 = smov 64   ;;  %s992_s22 = smov 4  }
  0x29   : > { %702 = dma.hbm_to_vmem [thread:$0]  (!%p1106_p11), %s1337_s1, 128, %s1099_s29, [#allocation10], %s991_s21, %s991_s21, %s992_s22  }
  0x2a   : > { %s843_s9 = scalar_lea.hbm %s1338_s2, 128 }
  0x2b   : > { %p844_p1 = scmp.ne.s32.totalorder %s1338_s2, %s843_s9  ;;  %p850_p10 = scmp.lt.u32.totalorder %s843_s9, %s1338_s2 }
  0x2d   : > { %p846_p4 = pnand %p844_p1, %p817_p13 }
  0x2f   : > { %p847_p6 = pneg %p846_p4 }
  0x31   : > { %p852_p3 = pnand %p850_p10, %p847_p6 }
  0x33   : > { %855 = shalt.err (!%p852_p3)
}
  0x34   : > { %s856_s29 = scalar_lea.vmem %s1110_s6, 128  ;;  %p864_p12 = scmp.lt.s32.totalorder %s1110_s6, %s1110_s6 }
  0x35   : > { %p857_p5 = scmp.ne.s32.totalorder %s1110_s6, %s856_s29  ;;  %p865_p0 = scmp.lt.s32.totalorder %s856_s29, %s856_s29 }
  0x37   : > { %p859_p7 = pnand %p857_p5, %p817_p13  ;;  %p866_p1 = por %p865_p0, %p864_p12 }
  0x39   : > { %p860_p9 = pneg %p859_p7 }
  0x3b   : > { %p867_p4 = pnand %p866_p1, %p860_p9 }
  0x3d   : > { %870 = shalt.err (!%p867_p4)
}
  0x3e   : > { %705 = dma.hbm_to_vmem [thread:$0]  (!%p1106_p11), %s1338_s2, 128, %s1110_s6, [#allocation10]  }
  0x3f   : > { %s33_s22 = sadd.s32 1, %s983_s19  ;;  %s42_s28 = sadd.s32 1, %s975_s17 }
  0x40   : > { %p35_p13 = scmp.ge.s32.totalorder %s33_s22, 2  ;;  %p49_p6 = scmp.ne.s32.totalorder %s975_s17, %s971_s16 }
  0x41   : > { %p50_p10 = scmp.eq.s32.totalorder %s987_s20, 0  ;;  %p716_p3 = scmp.lt.s32.totalorder %s987_s20, 2 }
  0x42   : > { %s1364_s22 = smov (%p35_p13, %s33_s22), 0  ;;  %p1174_p7 = por %p1079_p2, %p49_p6 }
  0x43   : > { %p51_p5 = por %p50_p10, %p49_p6  ;;  %s37_s5 = ssub.s32 %s983_s19, %s1364_s22 }
  0x44   : > { %s1351_s30 = scalar_select %p1174_p7, 1, 0 }
  0x45   : > { %s197_s7 = sand.u32 1, %s975_s17   ;;  %p40_p9 = scmp.eq.s32.totalorder %s37_s5, 0 }
  0x46   : > { %s658_s6 = sshll.u32 %s197_s7, 4  ;;  %s675_s8 = sshll.u32 %s983_s19, 8 }
  0x47   : > { %s1183_s9 = scalar_select %p40_p9, %s975_s17, %s42_s28  }
  0x48   : > { %s1188_s12 = scalar_lea.hbm %s1336_s0, %s675_s8  ;;  %s201_s24 = scalar_lea.vmem [#allocation6], %s658_s6 }
  0x49   : > { %s210_s13 = sshll.u32 %s201_s24, 4  ;;  %p1192_p2 = pnand %p716_p3, %p51_p5  ;;  %s1196_s13 = int_to_ptr.vmem [resolvable:$true] %s210_s13 }
  0x4a   : > { %s1198_s14 = scalar_lea.sflag [#allocation7], %s197_s7  ;;  %s871_s21 = scalar_lea.hbm %s1188_s12, 256 }
  0x4b   : > { %p872_p11 = scmp.ne.s32.totalorder %s1188_s12, %s871_s21  ;;  %p873_p12 = pneg %p1192_p2 }
  0x4c   : > { %s876_s6 = scalar_lea.hbm %s1336_s0, 512  ;;  %p877_p4 = scmp.lt.u32.totalorder %s1188_s12, %s1336_s0 }
  0x4d   : > { %p874_p0 = pnand %p873_p12, %p872_p11  ;;  %p878_p13 = scmp.lt.u32.totalorder %s876_s6, %s871_s21 }
  0x4e   : > { %p880_p10 = scmp.lt.u32.totalorder %s871_s21, %s1188_s12 }
  0x4f   : > { %p875_p1 = pneg %p874_p0  ;;  %p879_p6 = por %p878_p13, %p877_p4 }
  0x51   : > { %p881_p3 = por %p880_p10, %p879_p6 }
  0x53   : > { %p882_p5 = pnand %p881_p3, %p875_p1 }
  0x55   : > { %885 = shalt.err (!%p882_p5)
}
  0x56   : > { %s886_s7 = scalar_lea.vmem %s1196_s13, 256  ;;  %s993_s11 = smov [#allocation6]  }
  0x57   : > { %p887_p9 = scmp.ne.s32.totalorder %s1196_s13, %s886_s7  ;;  %s891_s24 = sshll.u32 %s993_s11, 4  ;;  %s892_s24 = int_to_ptr.vmem [resolvable:$false] %s891_s24 }
  0x58   : > { %s893_s28 = scalar_lea.vmem %s892_s24, 512  ;;  %p894_p7 = scmp.lt.s32.totalorder %s1196_s13, %s892_s24 }
  0x59   : > { %p889_p11 = pnand %p887_p9, %p873_p12  ;;  %p895_p4 = scmp.lt.s32.totalorder %s893_s28, %s886_s7 }
  0x5b   : > { %p890_p0 = pneg %p889_p11  ;;  %p896_p13 = por %p895_p4, %p894_p7 }
  0x5d   : > { %p897_p6 = pnand %p896_p13, %p890_p0 }
  0x5f   : > { %900 = shalt.err (!%p897_p6)
}
  0x60   : > { %s994_s21 = smov 128   ;;  %s995_s5 = smov 8  }
  0x61   : > { %709 = dma.hbm_to_vmem [thread:$0]  (!%p1192_p2), %s1188_s12, 256, %s1196_s13, %s1198_s14, %s994_s21, %s994_s21, %s995_s5  }
  0x62   : > { %222 = sbr.rel (%p1095_p8) target bundleno = 1284 (0x504), region = 36  ;;  %s1229_s6 = sand.u32 (!%p1095_p8), 1, %s971_s16  }
  0x63   : > { %s662_s8 = sshll.u32 (!%p1095_p8), %s1229_s6, 4  ;;  %s225_s10 = scalar_lea.sflag (!%p1095_p8), [#allocation7], %s1229_s6 }
  0x64   : > { %s228_s7 = scalar_lea.vmem (!%p1095_p8), [#allocation6], %s662_s8  ;;  %p1353_p7 = scmp.ne.s32.totalorder (!%p1095_p8), %s1347_s25, 0 }
  0x69   : > { %954 = dma.done.wait (%p1353_p7), %s225_s10, 256  }
  0x6a   : > { %956 = vsyncadd (%p1353_p7), %s225_s10, 4294967040  ;;  %p1354_p12 = scmp.ne.s32.totalorder %s1345_s23, 0 }
  0x6c   : > { %958 = dma.done.wait (%p1354_p12), [#allocation10], 256  }
  0x6d   : > { %960 = vsyncadd (%p1354_p12), [#allocation10], 4294967040  ;;  %v996_v0 = vmov 0.0   ;;  %vm997_vm0 = vmmov 0   ;;  %v800_v1 = vld [vmem:[%s228_s7] ss:$8 sps:$4 sm:$0xff]   ;;  %v356_v8 = vlaneseq }
  0x6e   : > { %679 = vmatprep.subr.bf16.mxu0 %v996_v0  ;;  %683 = vmatprep.mubr.msk.bf16.mxu0 %vm997_vm0, %v996_v0  ;;  %v802_v2 = vld [vmem:[%s228_s7 + $0x4] ss:$8 sps:$4 sm:$0xff]   ;;  %s998_s27 = smov 112   ;;  %v803_v3 = vld [vmem:[%s228_s7] ss:$8 sps:$4 sm:$0xff]   ;;  %vm285_vm1 = vcmask 916480  }
  0x6f   : > { %281 = vrot.lane.b32.xlu0 %v800_v1, %s998_s27  ;;  %680 = vmatpush3.bf16.msra.mxu0 %v803_v3  ;;  %v804_v7 = vld [vmem:[#allocation9] sm:$0xff]   ;;  %vm298_vm2 = vcmask 261120   ;;  %v357_v9 = vand.u32 127, %v356_v8  ;;  %s999_s23 = smov 104   ;;  %s1000_s25 = smov 120   ;;  %v1001_v19 = vmov 3  }
  0x70   : > { %681 = vmatprep.subr.bf16.mxu0 %v996_v0  ;;  %793 = vset.pattern.permute.xlu0 %v1001_v19  ;;  %s1002_s12 = smov 88   ;;  %s1003_s13 = smov 72   ;;  %v366_v20 = vld [vmem:[#allocation11] sm:$0xff]  ;;  %v1006_v44 = vmov 4   ;;  %v1256_v45 = vld [vmem:[%s1339_s3] sm:$0xff]  ;;  %vm422_vm6 = vcmask 7168  }
  0x71   : > { %v359_v10 = vadd.s32 4294967284, %v357_v9  ;;  %s1004_s29 = smov 96   ;;  %s1005_s14 = smov 80   ;;  %794 = vset.pattern.permute.xlu1 %v1006_v44  ;;  %vm424_vm7 = vcmask 15360   ;;  %vm426_vm8 = vcmask 23552   ;;  %vm428_vm9 = vcmask 31744  }
  0x72   : > { %vm430_vm10 = vcmask 39936   ;;  %vm432_vm11 = vcmask 48128   ;;  %vm434_vm12 = vcmask 56320   ;;  %vm436_vm13 = vcmask 64512   ;;  %s1007_s28 = smov 1   ;;  %s1009_s21 = smov 2  }
  0x73   : > { %283 = vrot.lane.b32.xlu0 %v802_v2, %s998_s27  ;;  %vm360_vm3 = vcmp.ge.s32.totalorder %v359_v10, 0  ;;  %vm361_vm4 = vcmp.lt.s32.totalorder %v359_v10, 64  ;;  %s1010_s5 = smov 4   ;;  %v1013_v19 = vmov 5   ;;  %s1014_s8 = smov 121  }
  0x74   : > { %vm362_vm5 = vmand %vm360_vm3, %vm361_vm4  ;;  %s665_s10 = sshll.u32 %s1229_s6, 3  ;;  %s672_s7 = sshll.u32 %s979_s18, 7 }
  0x75   : > { %p1355_p2 = scmp.ne.s32.totalorder %s1351_s30, 0  ;;  %s1015_s18 = smov [#allocation12]  }
  0x76   : > { %s905_s11 = sshll.u32 %s1015_s18, 4  ;;  %s906_s11 = int_to_ptr.vmem [resolvable:$false] %s905_s11 }
  0x77   : > { %s907_s24 = scalar_lea.vmem %s906_s11, 256 }
  0xe1   : > { %v282_v4 = vpop.permute.xlu0 %281 }
  0xe5   : > { %v284_v5 = vpop.permute.xlu0 %283 }
  0xe6   : > { %v286_v6 = vsel %vm285_vm1, %v282_v4, %v284_v5 }
  0xe7   : > { %682 = vmatpush3.bf16.msra.mxu0 %v286_v6 }
  0xea   : > { %684 = vmatmul.mubr.msk.bf16.vlgmr.msra.gmra.mrb[0].mxu0 %vm298_vm2, %v804_v7  ;;  %v1008_v7 = vmov 0  }
 0x1bd   : > { %v336_v11 = vpop.f32.mrb[0].mxu0 }
 0x1be   : > { %v685_v12 = vpop.f32.mrb[1].mxu0  ;;  %v343_v14 = vmul.f32 %v336_v11, %v336_v11 }
 0x1bf   : > { %v339_v13 = vpop.f32.mrb[2].mxu0 }
 0x1c0   : > { %v344_v15 = vmul.f32 %v339_v13, %v339_v13  ;;  %v686_v16 = vpop.f32.mrb[3].mxu0 }
 0x1c2   : > { %v345_v17 = vadd.f32 %v344_v15, %v343_v14 }
 0x1c4   : > { %v364_v18 = vsel %vm362_vm5, %v345_v17, 0.0  ;;  %v1011_v17 = vmov 1  }
 0x1c5   : > { %387 = vrot.lane.b32.xlu0 %v364_v18, %s999_s23  ;;  %373 = vrot.lane.b32.xlu1 %v364_v18, %s1000_s25  ;;  %v368_v21 = vmul.f32 %v366_v20, %v364_v18 }
 0x1c7   : > { %v369_v22 = vsel %vm298_vm2, %v368_v21, 0.0 }
 0x1c9   : > { %401 = vrot.lane.b32.xlu0 %v364_v18, %s1002_s12  ;;  %380 = vrot.lane.b32.xlu1 %v364_v18, %s998_s27  ;;  %s260_s27 = scalar_lea.vmem [#allocation12], %s665_s10 }
 0x1ca   : > { %s551_s23 = sshll.u32 %s260_s27, 4  ;;  %s1288_s23 = int_to_ptr.vmem [resolvable:$true] %s551_s23 }
 0x1cb   : > { %p908_p3 = scmp.lt.s32.totalorder %s1288_s23, %s906_s11 }
 0x1cd   : > { %415 = vrot.lane.b32.xlu0 %v364_v18, %s1003_s13  ;;  %394 = vrot.lane.b32.xlu1 %v364_v18, %s1004_s29  ;;  %s1286_s13 = scalar_lea.hbm %s1340_s4, %s672_s7  ;;  %s537_s29 = scalar_lea.sflag [#allocation8], %s1229_s6 }
 0x1d1   : > { %408 = vrot.lane.b32.xlu1 %v364_v18, %s1005_s14  ;;  %v1012_v18 = vmov 2   ;;  %s901_s14 = scalar_lea.vmem %s1288_s23, 128 }
 0x1d2   : > { %p902_p8 = scmp.ne.s32.totalorder %s1288_s23, %s901_s14  ;;  %p909_p5 = scmp.lt.s32.totalorder %s907_s24, %s901_s14 }
 0x1d4   : > { %p903_p1 = pnand %p902_p8, %p1355_p2  ;;  %p910_p9 = por %p909_p5, %p908_p3 }
 0x1d6   : > { %p904_p10 = pneg %p903_p1 }
 0x1d8   : > { %p911_p11 = pnand %p910_p9, %p904_p10 }
 0x1f5   : > { %370 = vadd.xlane.f32.xlu1 %v369_v22 }
 0x237   : > { %v388_v23 = vpop.permute.xlu0 %387  ;;  %v374_v24 = vpop.permute.xlu1 %373 }
 0x238   : > { %v390_v25 = vmul.f32 %v388_v23, %v366_v20  ;;  %v376_v26 = vmul.f32 %v374_v24, %v366_v20 }
 0x23a   : > { %v377_v27 = vsel %vm298_vm2, %v376_v26, 0.0  ;;  %v391_v28 = vsel %vm298_vm2, %v390_v25, 0.0 }
 0x23b   : > { %v402_v29 = vpop.permute.xlu0 %401  ;;  %378 = vadd.xlane.f32.xlu0 %v377_v27  ;;  %v381_v30 = vpop.permute.xlu1 %380  ;;  %392 = vadd.xlane.f32.xlu1 %v391_v28 }
 0x23c   : > { %v404_v31 = vmul.f32 %v402_v29, %v366_v20  ;;  %v383_v32 = vmul.f32 %v381_v30, %v366_v20 }
 0x23e   : > { %v384_v33 = vsel %vm298_vm2, %v383_v32, 0.0  ;;  %v405_v34 = vsel %vm298_vm2, %v404_v31, 0.0 }
 0x23f   : > { %v416_v35 = vpop.permute.xlu0 %415  ;;  %385 = vadd.xlane.f32.xlu0 %v384_v33  ;;  %v395_v36 = vpop.permute.xlu1 %394  ;;  %406 = vadd.xlane.f32.xlu1 %v405_v34 }
 0x240   : > { %v418_v37 = vmul.f32 %v416_v35, %v366_v20  ;;  %v397_v38 = vmul.f32 %v395_v36, %v366_v20 }
 0x242   : > { %v398_v39 = vsel %vm298_vm2, %v397_v38, 0.0  ;;  %v419_v40 = vsel %vm298_vm2, %v418_v37, 0.0 }
 0x243   : > { %399 = vadd.xlane.f32.xlu0 %v398_v39  ;;  %v409_v41 = vpop.permute.xlu1 %408  ;;  %420 = vadd.xlane.f32.xlu1 %v419_v40 }
 0x244   : > { %v411_v42 = vmul.f32 %v409_v41, %v366_v20 }
 0x246   : > { %v412_v43 = vsel %vm298_vm2, %v411_v42, 0.0 }
 0x247   : > { %413 = vadd.xlane.f32.xlu0 %v412_v43 }
 0x254   : > { %443 = vperm.xlu1 %794, %v1256_v45  }
 0x258   : > { %795 = vset.pattern.permute.xlu1 %v1008_v7 }
 0x25d   : > { %447 = vperm.xlu0 %793, %v1256_v45  }
 0x261   : > { %796 = vset.pattern.permute.xlu0 %v1008_v7 }
 0x262   : > { %508 = vperm.xlu0 %796, %v1256_v45  }
 0x266   : > { %799 = vset.pattern.permute.xlu0 %v1013_v19 }
 0x267   : > { %531 = vperm.xlu0 %799, %v1256_v45  }
 0x282   : > { %v371_v46 = vpop.xlane.xlu1 %370 }
 0x2c8   : > { %v379_v47 = vpop.xlane.xlu0 %378  ;;  %v393_v48 = vpop.xlane.xlu1 %392 }
 0x2c9   : > { %v423_v49 = vsel %vm422_vm6, %v371_v46, %v379_v47 }
 0x2cc   : > { %v386_v50 = vpop.xlane.xlu0 %385  ;;  %v407_v52 = vpop.xlane.xlu1 %406 }
 0x2cd   : > { %v425_v51 = vsel %vm424_vm7, %v423_v49, %v386_v50 }
 0x2ce   : > { %v427_v54 = vsel %vm426_vm8, %v425_v51, %v393_v48 }
 0x2d0   : > { %v400_v53 = vpop.xlane.xlu0 %399  ;;  %v421_v58 = vpop.xlane.xlu1 %420 }
 0x2d1   : > { %v429_v55 = vsel %vm428_vm9, %v427_v54, %v400_v53 }
 0x2d2   : > { %v431_v57 = vsel %vm430_vm10, %v429_v55, %v407_v52 }
 0x2d4   : > { %v414_v56 = vpop.xlane.xlu0 %413  ;;  %v444_v1 = vpop.permute.xlu1 %443 }
 0x2d5   : > { %v433_v59 = vsel %vm432_vm11, %v431_v57, %v414_v56  ;;  %v451_v6 = vsel %vm422_vm6, 1.0, %v444_v1 }
 0x2d6   : > { %v435_v60 = vsel %vm434_vm12, %v433_v59, %v421_v58  ;;  %v459_v8 = vmul.f32 %v451_v6, %v444_v1 }
 0x2d7   : > { %437 = vst.msk [vmem:[#allocation4] sm:$0xff] %vm436_vm13, %v435_v60 }
 0x2dc   : > { %v448_v61 = vpop.permute.xlu0 %447 }
 0x2de   : > { %v438_v62 = vld [vmem:[#allocation4] sm:$0xff] }
 0x2df   : > { %v1264_v63 = vmax.f32 %v438_v62, 1e-05 }
 0x2e1   : > { %v450_v0 = vmul.f32 %v448_v61, %v1264_v63  ;;  %490 = vst.msk [vmem:[#allocation5] sm:$0xff] %vm422_vm6, %v1264_v63  ;;  %v509_v33 = vpop.permute.xlu0 %508 }
 0x2e3   : > { %453 = vrot.lane.b32.xlu1 %v450_v0, %s1007_s28 }
 0x2e6   : > { %v532_v47 = vpop.permute.xlu0 %531 }
 0x2e8   : > { %v491_v16 = vld [vmem:[#allocation5] sm:$0xff] }
 0x355   : > { %v454_v2 = vpop.permute.xlu1 %453 }
 0x356   : > { %v456_v3 = vsel %vm422_vm6, 0.0, %v454_v2 }
 0x357   : > { %v457_v4 = vmul.f32 %v456_v3, %v444_v1 }
 0x359   : > { %v458_v5 = vadd.f32 %v457_v4, %v450_v0 }
 0x35b   : > { %466 = vrot.lane.b32.xlu1 %v458_v5, %s1009_s21 }
 0x35f   : > { %461 = vrot.lane.b32.xlu1 %v459_v8, %s1009_s21 }
 0x3cd   : > { %v467_v9 = vpop.permute.xlu1 %466 }
 0x3ce   : > { %v469_v10 = vsel %vm424_vm7, 0.0, %v467_v9 }
 0x3cf   : > { %v470_v13 = vmul.f32 %v469_v10, %v459_v8 }
 0x3d1   : > { %v462_v11 = vpop.permute.xlu1 %461  ;;  %v471_v15 = vadd.f32 %v470_v13, %v458_v5 }
 0x3d2   : > { %v464_v12 = vsel %vm424_vm7, 1.0, %v462_v11 }
 0x3d3   : > { %v472_v14 = vmul.f32 %v464_v12, %v459_v8 }
 0x3d5   : > { %474 = vrot.lane.b32.xlu1 %v472_v14, %s1010_s5 }
 0x3d9   : > { %479 = vrot.lane.b32.xlu1 %v471_v15, %s1010_s5 }
 0x3dd   : > { %494 = vperm.xlu1 %795, %v491_v16  }
 0x3e1   : > { %797 = vset.pattern.permute.xlu1 %v1011_v17 }
 0x3e2   : > { %517 = vperm.xlu1 %797, %v1256_v45  }
 0x3e6   : > { %798 = vset.pattern.permute.xlu1 %v1012_v18 }
 0x447   : > { %v475_v20 = vpop.permute.xlu1 %474 }
 0x448   : > { %v477_v23 = vsel %vm428_vm9, 1.0, %v475_v20 }
 0x449   : > { %v485_v25 = vmul.f32 %v477_v23, %v472_v14 }
 0x44b   : > { %v480_v21 = vpop.permute.xlu1 %479 }
 0x44c   : > { %v482_v22 = vsel %vm428_vm9, 0.0, %v480_v21 }
 0x44d   : > { %v483_v24 = vmul.f32 %v482_v22, %v472_v14 }
 0x44f   : > { %v484_v27 = vadd.f32 %v483_v24, %v471_v15 }
 0x45c   : > { %v495_v26 = vpop.permute.xlu1 %494 }
 0x45d   : > { %v497_v28 = vmul.f32 %v495_v26, %v485_v25 }
 0x45f   : > { %v498_v29 = vadd.f32 %v497_v28, %v484_v27 }
 0x461   : > { %500 = vrot.lane.b32.xlu1 %v498_v29, %s1014_s8  ;;  %v504_v30 = vadd.f32 1e-12, %v498_v29  ;;  %v518_v39 = vpop.permute.xlu1 %517 }
 0x463   : > { %805 = vlog2.f32 %v504_v30 }
 0x465   : > { %524 = vperm.xlu1 %798, %v1256_v45  }
 0x46d   : > { %v806_v31 = vpop.eup %805 }
 0x46e   : > { %v506_v32 = vmul.f32 0.6931472, %v806_v31 }
 0x470   : > { %v511_v34 = vmul.f32 %v509_v33, %v506_v32 }
 0x472   : > { %v512_v35 = vmul.f32 1.442695, %v511_v34 }
 0x474   : > { %807 = vpow2.f32 %v512_v35 }
 0x47e   : > { %v808_v36 = vpop.eup %807 }
 0x47f   : > { %809 = vrcp.f32 %v808_v36 }
 0x489   : > { %v810_v37 = vpop.eup %809 }
 0x48a   : > { %v515_v38 = vmul.f32 %v810_v37, %v1264_v63 }
 0x48c   : > { %v520_v40 = vadd.f32 %v518_v39, %v515_v38 }
 0x48e   : > { %811 = vlog2.f32 %v520_v40 }
 0x498   : > { %v812_v42 = vpop.eup %811 }
 0x499   : > { %v522_v43 = vmul.f32 0.6931472, %v812_v42 }
 0x4d3   : > { %v501_v41 = vpop.permute.xlu1 %500 }
 0x4d4   : > { %503 = vst.msk [vmem:[#allocation5] sm:$0xff] %vm422_vm6, %v501_v41 }
 0x4e4   : > { %v525_v44 = vpop.permute.xlu1 %524 }
 0x4e5   : > { %v527_v45 = vmul.f32 %v525_v44, %v522_v43 }
 0x4e7   : > { %v528_v46 = vmul.f32 1.442695, %v527_v45 }
 0x4e9   : > { %813 = vpow2.f32 %v528_v46 }
 0x4f3   : > { %v814_v48 = vpop.eup %813 }
 0x4f4   : > { %v534_v49 = vsub.f32 %v814_v48, %v532_v47 }
 0x4f6   : > { %535 = vst.msk [vmem:[%s260_s27] sm:$0xff] %vm436_vm13, %v534_v49 }
 0x4f7   : > { %914 = shalt.err (!%p911_p11)
}
 0x4f8   : > { %s915_s6 = scalar_lea.hbm %s1286_s13, 128  ;;  %s919_s5 = scalar_lea.hbm %s1340_s4, 256 }
 0x4f9   : > { %p916_p0 = scmp.ne.s32.totalorder %s1286_s13, %s915_s6  ;;  %p920_p6 = scmp.lt.u32.totalorder %s1286_s13, %s1340_s4 }
 0x4fa   : > { %p921_p7 = scmp.lt.u32.totalorder %s919_s5, %s915_s6  ;;  %p923_p8 = scmp.lt.u32.totalorder %s915_s6, %s1286_s13 }
 0x4fb   : > { %p917_p4 = pnand %p916_p0, %p1355_p2 }
 0x4fc   : > { %p922_p12 = por %p921_p7, %p920_p6 }
 0x4fd   : > { %p918_p13 = pneg %p917_p4 }
 0x4fe   : > { %p924_p1 = por %p923_p8, %p922_p12 }
 0x500   : > { %p925_p10 = pnand %p924_p1, %p918_p13 }
 0x502   : > { %928 = shalt.err (!%p925_p10)
}
 0x503   : > { %697 = dma.vmem_to_hbm [thread:$0]  (%p1355_p2), %s1288_s23, 128, %s1286_s13, %s537_s29  }
 0x504 PF: > { %s563_s7 = sand.u32 1, %s967_s15   ;;  %p1356_p3 = scmp.ne.s32.totalorder %s1348_s26, 0 }
 0x505   : > { %p1357_p5 = scmp.ge.s32.totalorder %s987_s20, 2  ;;  %s564_s27 = scalar_lea.sflag [#allocation8], %s563_s7 }
 0x507   : > { %p711_p9 = pnand %p1357_p5, %p1356_p3 }
 0x509   : > { %962 = dma.done.wait (!%p711_p9), %s564_s27, 128  }
 0x50a   : > { %964 = vsyncadd (!%p711_p9), %s564_s27, 4294967168  ;;  %s21_s20 = sadd.s32 1, %s987_s20   ;;  %s1358_s15 = smov %s971_s16 }
 0x50b   : > { %p18_p11 = scmp.ge.s32.totalorder %s21_s20, 4   ;;  %s1359_s16 = smov %s975_s17 }
 0x50c   : > { %s1360_s17 = smov %s1183_s9  ;;  %s1361_s18 = smov %s983_s19 }
 0x50d   : > { %s1362_s19 = smov %s1364_s22  ;;  %20 = sbr.rel (!%p18_p11) target bundleno = 7 (0x7), region = 97 }
 0x514   :  { %569 = vsyncpa [#allocation7], 1 }
 0x515   :  { %571 = vsyncpa [#allocation7 + $0x1], 1 }
 0x516   :  { %572 = vsyncpa [#allocation10], 1 }
 0x517   :  { %573 = vsyncpa [#allocation8], 1 }
 0x518   :  { %575 = vsyncpa [#allocation8 + $0x1], 1 }

</bundles_post_ra>
